<compile_context>
chip_gen: v5e
topology: v5e:2x2
jax: 0.10.0
libtpu: 0.0.40
codegen_flags: <defaults>
</compile_context>

<pallas_src>
import functools
import numpy as np
import jax
import jax.numpy as jnp
from jax.experimental import pallas as pl
from jax.experimental.pallas import tpu as pltpu


# ---------------------------------------------------------------------------
# interpolation matrices (host-side numpy; applied as MXU matmuls in-kernel)
# ---------------------------------------------------------------------------
def _area_matrix(T: int, S: int) -> np.ndarray:
    """F.interpolate(mode='area') from length T to S."""
    A = np.zeros((S, T), dtype=np.float32)
    for j in range(S):
        start = (j * T) // S
        end = ((j + 1) * T + S - 1) // S  # ceil((j+1)*T/S)
        A[j, start:end] = 1.0 / (end - start)
    return A


def _linear_matrix(S: int, T: int) -> np.ndarray:
    """F.interpolate(mode='linear', align_corners=False) from length S to T."""
    A = np.zeros((T, S), dtype=np.float32)
    scale = S / T
    for t in range(T):
        src = max(scale * (t + 0.5) - 0.5, 0.0)
        i0 = min(int(np.floor(src)), S - 1)
        i1 = min(i0 + 1, S - 1)
        lam = src - i0
        A[t, i0] += 1.0 - lam
        A[t, i1] += lam
    return A


# ---------------------------------------------------------------------------
# fused kernel: grid=(Q,) over quantizers, residual & z_q resident on-chip
# ---------------------------------------------------------------------------
def _make_rvq_kernel(B, T, D, Dc, K, S_max, pairs, mm_dtype):
    BT, BC, BS = B * T, B * Dc, B * S_max
    inv_btc = np.float32(1.0 / (B * T * Dc))
    inv_btd = np.float32(1.0 / (B * T * D))

    def kernel(z_ref, w_in_ref, b_in_ref, w_out_ref, b_out_ref,
               cb_ref, cbn_t_ref, a_dn_t_ref, a_up_t_ref,
               zq_ref, codes_ref, lat_ref, stats_ref, *scratch):
        res_ref = scratch[0]
        snap_ref = scratch[1] if len(scratch) > 1 else None
        q = pl.program_id(0)

        @pl.when(q == 0)
        def _init():
            res_ref[...] = z_ref[...]
            zq_ref[...] = jnp.zeros_like(zq_ref)
            stats_ref[...] = jnp.zeros_like(stats_ref)

        res = res_ref[...]                                          # (B,T,D) f32

        # ---- in_proj (1x1 conv); batch flattened into the MXU M dim ---------
        z_e2d = jnp.dot(res.reshape(BT, D).astype(mm_dtype), w_in_ref[...],
                        preferred_element_type=jnp.float32) + b_in_ref[...]
        z_e_bct = jnp.transpose(z_e2d.reshape(B, T, Dc), (0, 2, 1))  # (B,Dc,T)
        lat_ref[...] = z_e_bct                                       # lane-dense latents

        # ---- area down-sample over time: (B*Dc,T) @ (T,S_max) ----------------
        ds = jnp.dot(z_e_bct.reshape(BC, T).astype(mm_dtype), a_dn_t_ref[...],
                     preferred_element_type=jnp.float32)             # (B*Dc,S)
        enc = jnp.transpose(ds.reshape(B, Dc, S_max), (0, 2, 1))     # (B,S,Dc)

        # ---- nearest neighbour in cosine space --------------------------------
        # dist = 2 - 2*cos, so argmin(dist) == argmax(enc . cb_n^T); cb_n is
        # precomputed on the host.  First-occurrence argmax via max + masked
        # min-index (equivalent to jnp.argmax, robust lowering).
        cross = jnp.dot(enc.reshape(BS, Dc).astype(mm_dtype), cbn_t_ref[...],
                        preferred_element_type=jnp.float32).reshape(B, S_max, K)
        m = jnp.max(cross, axis=-1, keepdims=True)
        k_iota = jax.lax.broadcasted_iota(jnp.int32, (B, S_max, K), 2)
        idx = jnp.min(jnp.where(cross >= m, k_iota, K), axis=-1)     # (B,S)
        codes_ref[...] = idx.astype(jnp.int32)

        # ---- embedding lookup (exact row select via f32 one-hot matmul) -------
        oh = (k_iota == idx[..., None]).astype(jnp.float32)          # (B,S,K)
        zq_s = jnp.dot(oh.reshape(BS, K), cb_ref[...],
                       preferred_element_type=jnp.float32)           # (B*S,Dc)
        zq_s_bcs = jnp.transpose(zq_s.reshape(B, S_max, Dc), (0, 2, 1))

        # ---- linear up-sample back to T: (B*Dc,S) @ (S,T) ---------------------
        zq_bct = jnp.dot(zq_s_bcs.reshape(BC, S_max).astype(mm_dtype),
                         a_up_t_ref[...],
                         preferred_element_type=jnp.float32).reshape(B, Dc, T)

        # ---- fused commitment / codebook loss (identical values in eval) ------
        d2 = ((z_e_bct - zq_bct) ** 2).reshape(BC, T)
        loss11 = jnp.sum(jnp.sum(d2, axis=1, keepdims=True),
                         axis=0, keepdims=True) * inv_btc            # (1,1)
        stats_ref[0:1, :] += loss11

        # ---- straight-through value -> out_proj -> residual / z_q update ------
        zqu2d = jnp.transpose(zq_bct, (0, 2, 1)).reshape(BT, Dc).astype(mm_dtype)
        zq_out = (jnp.dot(zqu2d, w_out_ref[...],
                          preferred_element_type=jnp.float32)
                  + b_out_ref[...]).reshape(B, T, D)
        zq_ref[...] = zq_ref[...] + zq_out
        res_ref[...] = res - zq_out

        # ---- aux loss between z_q snapshots of repeated scales (static plan) --
        for j, (qa, qb) in enumerate(pairs):
            @pl.when(q == qa)
            def _snap(j=j):
                snap_ref[j] = zq_ref[...]

            @pl.when(q == qb)
            def _aux(j=j):
                a2 = ((zq_ref[...] - snap_ref[j]) ** 2).reshape(BT, D)
                aux11 = jnp.sum(jnp.sum(a2, axis=1, keepdims=True),
                                axis=0, keepdims=True) * inv_btd
                stats_ref[1 + j:2 + j, :] = aux11

    return kernel


# ---------------------------------------------------------------------------
# full WavescaleResidualVectorQuantize forward (eval mode)
# ---------------------------------------------------------------------------
@functools.partial(jax.jit, static_argnames=("wavescale_factors", "mm_dtype"))
def wavescale_rvq_forward(z_nct, params, *, wavescale_factors,
                          mm_dtype=jnp.bfloat16):
    """z_nct: (B, D, T) f32.  Returns (z_q[B,D,T], codes, latents,
    commitment_loss, codebook_loss, aux_loss) matching the PyTorch module."""
    B, D, T = z_nct.shape
    Q = len(wavescale_factors)
    Dc = params[0]['w_in'].shape[0]
    K = params[0]['codebook'].shape[0]

    scales = []
    for sf in wavescale_factors:
        s = int(sf * T)
        scales.append(s + 1 if s == 0 else s)
    S_max = max(scales)

    # repeated-scale (first, second) occurrence pairs -> aux-loss schedule
    occ = {}
    for i, s in enumerate(scales):
        occ.setdefault(s, []).append(i)
    pairs = tuple((v[0], v[1]) for _, v in occ.items() if len(v) >= 2)
    n_stats = 1 + len(pairs)

    # ---- stack per-quantizer parameters over Q (one-time layout plumbing) ----
    w_in_t = jnp.stack([p['w_in'].T for p in params]).astype(mm_dtype)    # (Q,D,Dc)
    b_in = jnp.stack([p['b_in'] for p in params]).astype(jnp.float32)     # (Q,1,Dc)
    w_out_t = jnp.stack([p['w_out'].T for p in params]).astype(mm_dtype)  # (Q,Dc,D)
    b_out = jnp.stack([p['b_out'] for p in params]).astype(jnp.float32)   # (Q,1,D)
    cb = jnp.stack([p['codebook'] for p in params]).astype(jnp.float32)   # (Q,K,Dc)
    cb_n = cb / jnp.maximum(
        jnp.sqrt(jnp.sum(cb * cb, axis=-1, keepdims=True)), 1e-12)
    cb_n_t = jnp.swapaxes(cb_n, 1, 2).astype(mm_dtype)                    # (Q,Dc,K)

    a_dn_t_np = np.zeros((Q, T, S_max), np.float32)
    a_up_t_np = np.zeros((Q, S_max, T), np.float32)
    for i, s in enumerate(scales):
        a_dn_t_np[i, :, :s] = _area_matrix(T, s).T       # padded cols -> zero enc
        a_up_t_np[i, :s, :] = _linear_matrix(s, T).T     # padded rows -> no contrib
    a_dn_t = jnp.asarray(a_dn_t_np, dtype=mm_dtype)
    a_up_t = jnp.asarray(a_up_t_np, dtype=mm_dtype)

    z_ntc = jnp.transpose(z_nct, (0, 2, 1)).astype(jnp.float32)

    kernel = _make_rvq_kernel(B, T, D, Dc, K, S_max, pairs, mm_dtype)

    grid_spec = pltpu.PrefetchScalarGridSpec(
        num_scalar_prefetch=0,
        grid=(Q,),
        in_specs=[
            pl.BlockSpec((B, T, D), lambda q: (0, 0, 0)),        # z (resident)
            pl.BlockSpec((None, D, Dc), lambda q: (q, 0, 0)),    # w_in^T
            pl.BlockSpec((None, 1, Dc), lambda q: (q, 0, 0)),    # b_in
            pl.BlockSpec((None, Dc, D), lambda q: (q, 0, 0)),    # w_out^T
            pl.BlockSpec((None, 1, D), lambda q: (q, 0, 0)),     # b_out
            pl.BlockSpec((None, K, Dc), lambda q: (q, 0, 0)),    # codebook
            pl.BlockSpec((None, Dc, K), lambda q: (q, 0, 0)),    # normalized cb^T
            pl.BlockSpec((None, T, S_max), lambda q: (q, 0, 0)), # area dn (T,S)
            pl.BlockSpec((None, S_max, T), lambda q: (q, 0, 0)), # linear up (S,T)
        ],
        out_specs=[
            pl.BlockSpec((B, T, D), lambda q: (0, 0, 0)),            # z_q accumulator
            pl.BlockSpec((None, B, S_max), lambda q: (q, 0, 0)),     # codes
            pl.BlockSpec((None, B, Dc, T), lambda q: (q, 0, 0, 0)),  # latents (NCT)
            pl.BlockSpec((n_stats, 1), lambda q: (0, 0)),            # losses
        ],
        scratch_shapes=(
            [pltpu.VMEM((B, T, D), jnp.float32)]                     # residual
            + ([pltpu.VMEM((len(pairs), B, T, D), jnp.float32)] if pairs else [])
        ),
    )

    flops = 2 * Q * B * (T * D * Dc + Dc * T * S_max + S_max * Dc * K
                         + S_max * K * Dc + Dc * S_max * T + T * Dc * D)
    bytes_io = 4 * (z_ntc.size + B * T * D + Q * (B * S_max + B * Dc * T)
                    + w_in_t.size + w_out_t.size + cb.size + cb_n_t.size
                    + a_dn_t.size + a_up_t.size + b_in.size + b_out.size)

    zq_ntc, codes_all, latents_all, stats = pl.pallas_call(
        kernel,
        grid_spec=grid_spec,
        out_shape=(
            jax.ShapeDtypeStruct((B, T, D), jnp.float32),
            jax.ShapeDtypeStruct((Q, B, S_max), jnp.int32),
            jax.ShapeDtypeStruct((Q, B, Dc, T), jnp.float32),
            jax.ShapeDtypeStruct((n_stats, 1), jnp.float32),
        ),
        compiler_params=pltpu.CompilerParams(
            dimension_semantics=("arbitrary",),
            vmem_limit_bytes=48 * 1024 * 1024,
        ),
        cost_estimate=pl.CostEstimate(flops=int(flops), transcendentals=0,
                                      bytes_accessed=int(bytes_io)),
    )(z_ntc, w_in_t, b_in, w_out_t, b_out, cb, cb_n_t, a_dn_t, a_up_t)

    z_q = jnp.transpose(zq_ntc, (0, 2, 1))                    # back to NCT
    codes = [codes_all[i, :, :scales[i]] for i in range(Q)]   # list of (B, S_i)
    latents = [latents_all[i] for i in range(Q)]              # already (B, Dc, T)
    commitment_loss = stats[0, 0]
    codebook_loss = stats[0, 0]       # identical value in eval-mode forward
    aux_loss = jnp.sum(stats[1:, 0]) if pairs else jnp.float32(0.0)
    return z_q, codes, latents, commitment_loss, codebook_loss, aux_loss


# ---------------------------------------------------------------------------
# deterministic synthetic parameters (weight-norm conv == plain conv at init)
# ---------------------------------------------------------------------------
def init_params(key, n_codebooks, input_dim, codebook_size, codebook_dim):
    params = []
    for i in range(n_codebooks):
        k = jax.random.fold_in(key, i)
        k1, k2, k3, k4, k5 = jax.random.split(k, 5)
        params.append(dict(
            w_in=0.1 * jax.random.normal(k1, (codebook_dim, input_dim), jnp.float32),
            b_in=0.01 * jax.random.normal(k2, (1, codebook_dim), jnp.float32),
            w_out=0.1 * jax.random.normal(k3, (input_dim, codebook_dim), jnp.float32),
            b_out=0.01 * jax.random.normal(k4, (1, input_dim), jnp.float32),
            codebook=jax.random.normal(k5, (codebook_size, codebook_dim), jnp.float32),
        ))
    return params


if __name__ == "__main__":
    # small config consistent with the module
    base_scale_factors = [0.25, 0.5, 1.0]
    # _compute_wavescale: reversed + tail, n_codebooks = 2*len - 1
    wavescale_factors = tuple(base_scale_factors[::-1] + base_scale_factors[1:])
    n_codebooks = len(base_scale_factors) * 2 - 1

    B, D, T = 2, 32, 16
    codebook_size, codebook_dim = 64, 8

    key = jax.random.PRNGKey(0)
    kz, kp = jax.random.split(key)
    z = jax.random.normal(kz, (B, D, T), jnp.float32)
    params = init_params(kp, n_codebooks, D, codebook_size, codebook_dim)

    out = wavescale_rvq_forward(z, params, wavescale_factors=wavescale_factors)
    for leaf in jax.tree_util.tree_leaves(out):
        jax.block_until_ready(leaf)

    print("KERNEL_OK")
</pallas_src>

<mosaic_0001>
module attributes {stable_mosaic.version = 11 : i64} {
  func.func @kernel(%arg0: i32, %arg1: memref<2x16x32xf32, #tpu.memory_space<vmem>>, %arg2: memref<1x32x8xbf16, #tpu.memory_space<vmem>>, %arg3: memref<1x1x8xf32, #tpu.memory_space<vmem>>, %arg4: memref<1x8x32xbf16, #tpu.memory_space<vmem>>, %arg5: memref<1x1x32xf32, #tpu.memory_space<vmem>>, %arg6: memref<1x64x8xf32, #tpu.memory_space<vmem>>, %arg7: memref<1x8x64xbf16, #tpu.memory_space<vmem>>, %arg8: memref<1x16x16xbf16, #tpu.memory_space<vmem>>, %arg9: memref<1x16x16xbf16, #tpu.memory_space<vmem>>, %arg10: memref<2x16x32xf32, #tpu.memory_space<vmem>>, %arg11: memref<1x2x16xi32, #tpu.memory_space<vmem>>, %arg12: memref<1x2x8x16xf32, #tpu.memory_space<vmem>>, %arg13: memref<3x1xf32, #tpu.memory_space<vmem>>, %arg14: memref<2x16x32xf32, #tpu.memory_space<vmem>>, %arg15: memref<2x2x16x32xf32, #tpu.memory_space<vmem>>) attributes {dimension_semantics = [#tpu.dimension_semantics<arbitrary>], iteration_bounds = array<i64: 5>, scalar_prefetch = 0 : i64, scratch_operands = 2 : i64, tpu.core_type = #tpu.core_type<tc>, window_params = [{pipeline_mode = #tpu.pipeline_mode<synchronous>, transform_indices = @transform_0, window_bounds = array<i64: 2, 16, 32>}, {transform_indices = @transform_1, window_bounds = array<i64: 1, 32, 8>}, {transform_indices = @transform_2, window_bounds = array<i64: 1, 1, 8>}, {transform_indices = @transform_3, window_bounds = array<i64: 1, 8, 32>}, {transform_indices = @transform_4, window_bounds = array<i64: 1, 1, 32>}, {transform_indices = @transform_5, window_bounds = array<i64: 1, 64, 8>}, {transform_indices = @transform_6, window_bounds = array<i64: 1, 8, 64>}, {transform_indices = @transform_7, window_bounds = array<i64: 1, 16, 16>}, {transform_indices = @transform_8, window_bounds = array<i64: 1, 16, 16>}, {pipeline_mode = #tpu.pipeline_mode<synchronous>, transform_indices = @transform_9, window_bounds = array<i64: 2, 16, 32>}, {transform_indices = @transform_10, window_bounds = array<i64: 1, 2, 16>}, {transform_indices = @transform_11, window_bounds = array<i64: 1, 2, 8, 16>}, {pipeline_mode = #tpu.pipeline_mode<synchronous>, transform_indices = @transform_12, window_bounds = array<i64: 3, 1>}]} {
    %c0_i32 = arith.constant 0 : i32
    %0 = arith.cmpi eq, %arg0, %c0_i32 : i32
    %1 = arith.extui %0 : i1 to i32
    %c0_i32_0 = arith.constant 0 : i32
    %2 = arith.cmpi ne, %1, %c0_i32_0 : i32
    scf.if %2 {
      %c0_62 = arith.constant 0 : index
      %c0_63 = arith.constant 0 : index
      %c0_64 = arith.constant 0 : index
      %99 = vector.load %arg1[%c0_62, %c0_63, %c0_64] : memref<2x16x32xf32, #tpu.memory_space<vmem>>, vector<2x16x32xf32>
      %c0_65 = arith.constant 0 : index
      %c0_66 = arith.constant 0 : index
      %c0_67 = arith.constant 0 : index
      %100 = vector.load %arg14[%c0_65, %c0_66, %c0_67] : memref<2x16x32xf32, #tpu.memory_space<vmem>>, vector<2x16x32xf32>
      tpu.vector_store %arg14[%c0_65, %c0_66, %c0_67], %99 {strides = array<i32>} : memref<2x16x32xf32, #tpu.memory_space<vmem>>, vector<2x16x32xf32>,
      %cst_68 = arith.constant 0.000000e+00 : f32
      %101 = vector.broadcast %cst_68 : f32 to vector<2x16x32xf32>
      %c0_69 = arith.constant 0 : index
      %c0_70 = arith.constant 0 : index
      %c0_71 = arith.constant 0 : index
      %102 = vector.load %arg10[%c0_69, %c0_70, %c0_71] : memref<2x16x32xf32, #tpu.memory_space<vmem>>, vector<2x16x32xf32>
      tpu.vector_store %arg10[%c0_69, %c0_70, %c0_71], %101 {strides = array<i32>} : memref<2x16x32xf32, #tpu.memory_space<vmem>>, vector<2x16x32xf32>,
      %cst_72 = arith.constant 0.000000e+00 : f32
      %103 = vector.broadcast %cst_72 : f32 to vector<3x1xf32>
      %c0_73 = arith.constant 0 : index
      %c0_74 = arith.constant 0 : index
      %104 = vector.load %arg13[%c0_73, %c0_74] : memref<3x1xf32, #tpu.memory_space<vmem>>, vector<3x1xf32>
      tpu.vector_store %arg13[%c0_73, %c0_74], %103 {strides = array<i32>} : memref<3x1xf32, #tpu.memory_space<vmem>>, vector<3x1xf32>,
    } else {
    }
    %c0 = arith.constant 0 : index
    %c0_1 = arith.constant 0 : index
    %c0_2 = arith.constant 0 : index
    %3 = vector.load %arg14[%c0, %c0_1, %c0_2] : memref<2x16x32xf32, #tpu.memory_space<vmem>>, vector<2x16x32xf32>
    %4 = vector.shape_cast %3 : vector<2x16x32xf32> to vector<32x32xf32>
    %5 = arith.truncf %4 : vector<32x32xf32> to vector<32x32xbf16>
    %c0_3 = arith.constant 0 : index
    %c0_4 = arith.constant 0 : index
    %c0_5 = arith.constant 0 : index
    %6 = vector.load %arg2[%c0_3, %c0_4, %c0_5] : memref<1x32x8xbf16, #tpu.memory_space<vmem>>, vector<1x32x8xbf16>
    %7 = vector.shape_cast %6 : vector<1x32x8xbf16> to vector<32x8xbf16>
    %cst = arith.constant dense<0.000000e+00> : vector<32x8xf32>
    %8 = tpu.matmul %5, %7, %cst {dimension_numbers = #tpu.dot_dimension_numbers<[1], [0], [0], [1], [0, 0, 1, 1], [], []>} : vector<32x32xbf16>, vector<32x8xbf16>, vector<32x8xf32> -> vector<32x8xf32>
    %c0_6 = arith.constant 0 : index
    %c0_7 = arith.constant 0 : index
    %c0_8 = arith.constant 0 : index
    %9 = vector.load %arg3[%c0_6, %c0_7, %c0_8] : memref<1x1x8xf32, #tpu.memory_space<vmem>>, vector<1x1x8xf32>
    %10 = vector.shape_cast %9 : vector<1x1x8xf32> to vector<1x8xf32>
    %11 = vector.broadcast %10 : vector<1x8xf32> to vector<32x8xf32>
    %12 = arith.addf %8, %11 : vector<32x8xf32>
    %13 = vector.shape_cast %12 : vector<32x8xf32> to vector<2x16x8xf32>
    %14 = tpu.transpose %13, [0, 2, 1] : vector<2x16x8xf32> -> vector<2x8x16xf32>
    %c0_9 = arith.constant 0 : index
    %c0_10 = arith.constant 0 : index
    %c0_11 = arith.constant 0 : index
    %c0_12 = arith.constant 0 : index
    %15 = vector.load %arg12[%c0_9, %c0_10, %c0_11, %c0_12] : memref<1x2x8x16xf32, #tpu.memory_space<vmem>>, vector<1x2x8x16xf32>
    %16 = vector.shape_cast %15 : vector<1x2x8x16xf32> to vector<2x8x16xf32>
    %17 = vector.shape_cast %14 : vector<2x8x16xf32> to vector<1x2x8x16xf32>
    tpu.vector_store %arg12[%c0_9, %c0_10, %c0_11, %c0_12], %17 {strides = array<i32>} : memref<1x2x8x16xf32, #tpu.memory_space<vmem>>, vector<1x2x8x16xf32>,
    %18 = vector.shape_cast %14 : vector<2x8x16xf32> to vector<16x16xf32>
    %19 = arith.truncf %18 : vector<16x16xf32> to vector<16x16xbf16>
    %c0_13 = arith.constant 0 : index
    %c0_14 = arith.constant 0 : index
    %c0_15 = arith.constant 0 : index
    %20 = vector.load %arg8[%c0_13, %c0_14, %c0_15] : memref<1x16x16xbf16, #tpu.memory_space<vmem>>, vector<1x16x16xbf16>
    %21 = vector.shape_cast %20 : vector<1x16x16xbf16> to vector<16x16xbf16>
    %cst_16 = arith.constant dense<0.000000e+00> : vector<16x16xf32>
    %22 = tpu.matmul %19, %21, %cst_16 {dimension_numbers = #tpu.dot_dimension_numbers<[1], [0], [0], [1], [0, 0, 1, 1], [], []>} : vector<16x16xbf16>, vector<16x16xbf16>, vector<16x16xf32> -> vector<16x16xf32>
    %23 = vector.shape_cast %22 : vector<16x16xf32> to vector<2x8x16xf32>
    %24 = tpu.transpose %23, [0, 2, 1] : vector<2x8x16xf32> -> vector<2x16x8xf32>
    %25 = vector.shape_cast %24 : vector<2x16x8xf32> to vector<32x8xf32>
    %26 = arith.truncf %25 : vector<32x8xf32> to vector<32x8xbf16>
    %c0_17 = arith.constant 0 : index
    %c0_18 = arith.constant 0 : index
    %c0_19 = arith.constant 0 : index
    %27 = vector.load %arg7[%c0_17, %c0_18, %c0_19] : memref<1x8x64xbf16, #tpu.memory_space<vmem>>, vector<1x8x64xbf16>
    %28 = vector.shape_cast %27 : vector<1x8x64xbf16> to vector<8x64xbf16>
    %cst_20 = arith.constant dense<0.000000e+00> : vector<32x64xf32>
    %29 = tpu.matmul %26, %28, %cst_20 {dimension_numbers = #tpu.dot_dimension_numbers<[1], [0], [0], [1], [0, 0, 1, 1], [], []>} : vector<32x8xbf16>, vector<8x64xbf16>, vector<32x64xf32> -> vector<32x64xf32>
    %30 = vector.shape_cast %29 : vector<32x64xf32> to vector<2x16x64xf32>
    %cst_21 = arith.constant dense<0xFF800000> : vector<2x16xf32>
    %31 = vector.multi_reduction <maximumf>, %30, %cst_21 [2] : vector<2x16x64xf32> to vector<2x16xf32>
    %32 = vector.shape_cast %31 : vector<2x16xf32> to vector<2x16x1xf32>
    %33 = tpu.iota {dimensions = array<i32: 2>} : vector<2x16x64xi32>
    %34 = vector.broadcast %32 : vector<2x16x1xf32> to vector<2x16x64xf32>
    %35 = arith.cmpf oge, %30, %34 : vector<2x16x64xf32>
    %c64_i32 = arith.constant 64 : i32
    %36 = vector.broadcast %c64_i32 : i32 to vector<2x16x64xi32>
    %37 = arith.select %35, %33, %36 : vector<2x16x64xi1>, vector<2x16x64xi32>
    %cst_22 = arith.constant dense<2147483647> : vector<2x16xi32>
    %38 = vector.multi_reduction <minsi>, %37, %cst_22 [2] : vector<2x16x64xi32> to vector<2x16xi32>
    %c0_23 = arith.constant 0 : index
    %c0_24 = arith.constant 0 : index
    %c0_25 = arith.constant 0 : index
    %39 = vector.load %arg11[%c0_23, %c0_24, %c0_25] : memref<1x2x16xi32, #tpu.memory_space<vmem>>, vector<1x2x16xi32>
    %40 = vector.shape_cast %39 : vector<1x2x16xi32> to vector<2x16xi32>
    %41 = vector.shape_cast %38 : vector<2x16xi32> to vector<1x2x16xi32>
    tpu.vector_store %arg11[%c0_23, %c0_24, %c0_25], %41 {strides = array<i32>} : memref<1x2x16xi32, #tpu.memory_space<vmem>>, vector<1x2x16xi32>,
    %42 = vector.shape_cast %38 : vector<2x16xi32> to vector<2x16x1xi32>
    %43 = vector.broadcast %42 : vector<2x16x1xi32> to vector<2x16x64xi32>
    %44 = arith.cmpi eq, %33, %43 : vector<2x16x64xi32>
    %45 = arith.extui %44 : vector<2x16x64xi1> to vector<2x16x64xi32>
    %46 = arith.sitofp %45 : vector<2x16x64xi32> to vector<2x16x64xf32>
    %47 = vector.shape_cast %46 : vector<2x16x64xf32> to vector<32x64xf32>
    %c0_26 = arith.constant 0 : index
    %c0_27 = arith.constant 0 : index
    %c0_28 = arith.constant 0 : index
    %48 = vector.load %arg6[%c0_26, %c0_27, %c0_28] : memref<1x64x8xf32, #tpu.memory_space<vmem>>, vector<1x64x8xf32>
    %49 = vector.shape_cast %48 : vector<1x64x8xf32> to vector<64x8xf32>
    %cst_29 = arith.constant dense<0.000000e+00> : vector<32x8xf32>
    %50 = tpu.matmul %47, %49, %cst_29 {dimension_numbers = #tpu.dot_dimension_numbers<[1], [0], [0], [1], [0, 0, 1, 1], [], []>} : vector<32x64xf32>, vector<64x8xf32>, vector<32x8xf32> -> vector<32x8xf32>
    %51 = vector.shape_cast %50 : vector<32x8xf32> to vector<2x16x8xf32>
    %52 = tpu.transpose %51, [0, 2, 1] : vector<2x16x8xf32> -> vector<2x8x16xf32>
    %53 = vector.shape_cast %52 : vector<2x8x16xf32> to vector<16x16xf32>
    %54 = arith.truncf %53 : vector<16x16xf32> to vector<16x16xbf16>
    %c0_30 = arith.constant 0 : index
    %c0_31 = arith.constant 0 : index
    %c0_32 = arith.constant 0 : index
    %55 = vector.load %arg9[%c0_30, %c0_31, %c0_32] : memref<1x16x16xbf16, #tpu.memory_space<vmem>>, vector<1x16x16xbf16>
    %56 = vector.shape_cast %55 : vector<1x16x16xbf16> to vector<16x16xbf16>
    %cst_33 = arith.constant dense<0.000000e+00> : vector<16x16xf32>
    %57 = tpu.matmul %54, %56, %cst_33 {dimension_numbers = #tpu.dot_dimension_numbers<[1], [0], [0], [1], [0, 0, 1, 1], [], []>} : vector<16x16xbf16>, vector<16x16xbf16>, vector<16x16xf32> -> vector<16x16xf32>
    %58 = vector.shape_cast %57 : vector<16x16xf32> to vector<2x8x16xf32>
    %59 = arith.subf %14, %58 : vector<2x8x16xf32>
    %60 = arith.mulf %59, %59 : vector<2x8x16xf32>
    %61 = vector.shape_cast %60 : vector<2x8x16xf32> to vector<16x16xf32>
    %cst_34 = arith.constant dense<0.000000e+00> : vector<16xf32>
    %62 = vector.multi_reduction <add>, %61, %cst_34 [1] : vector<16x16xf32> to vector<16xf32>
    %63 = vector.shape_cast %62 : vector<16xf32> to vector<16x1xf32>
    %cst_35 = arith.constant dense<0.000000e+00> : vector<1xf32>
    %64 = vector.multi_reduction <add>, %63, %cst_35 [0] : vector<16x1xf32> to vector<1xf32>
    %65 = vector.shape_cast %64 : vector<1xf32> to vector<1x1xf32>
    %cst_36 = arith.constant 3.906250e-03 : f32
    %66 = vector.broadcast %cst_36 : f32 to vector<1x1xf32>
    %67 = arith.mulf %65, %66 : vector<1x1xf32>
    %c0_37 = arith.constant 0 : index
    %c0_38 = arith.constant 0 : index
    %68 = vector.load %arg13[%c0_37, %c0_38] : memref<3x1xf32, #tpu.memory_space<vmem>>, vector<1x1xf32>
    %69 = arith.addf %68, %67 : vector<1x1xf32>
    %c0_39 = arith.constant 0 : index
    %c0_40 = arith.constant 0 : index
    %70 = vector.load %arg13[%c0_39, %c0_40] : memref<3x1xf32, #tpu.memory_space<vmem>>, vector<1x1xf32>
    tpu.vector_store %arg13[%c0_39, %c0_40], %69 {strides = array<i32>} : memref<3x1xf32, #tpu.memory_space<vmem>>, vector<1x1xf32>,
    %71 = tpu.transpose %58, [0, 2, 1] : vector<2x8x16xf32> -> vector<2x16x8xf32>
    %72 = vector.shape_cast %71 : vector<2x16x8xf32> to vector<32x8xf32>
    %73 = arith.truncf %72 : vector<32x8xf32> to vector<32x8xbf16>
    %c0_41 = arith.constant 0 : index
    %c0_42 = arith.constant 0 : index
    %c0_43 = arith.constant 0 : index
    %74 = vector.load %arg4[%c0_41, %c0_42, %c0_43] : memref<1x8x32xbf16, #tpu.memory_space<vmem>>, vector<1x8x32xbf16>
    %75 = vector.shape_cast %74 : vector<1x8x32xbf16> to vector<8x32xbf16>
    %cst_44 = arith.constant dense<0.000000e+00> : vector<32x32xf32>
    %76 = tpu.matmul %73, %75, %cst_44 {dimension_numbers = #tpu.dot_dimension_numbers<[1], [0], [0], [1], [0, 0, 1, 1], [], []>} : vector<32x8xbf16>, vector<8x32xbf16>, vector<32x32xf32> -> vector<32x32xf32>
    %c0_45 = arith.constant 0 : index
    %c0_46 = arith.constant 0 : index
    %c0_47 = arith.constant 0 : index
    %77 = vector.load %arg5[%c0_45, %c0_46, %c0_47] : memref<1x1x32xf32, #tpu.memory_space<vmem>>, vector<1x1x32xf32>
    %78 = vector.shape_cast %77 : vector<1x1x32xf32> to vector<1x32xf32>
    %79 = vector.broadcast %78 : vector<1x32xf32> to vector<32x32xf32>
    %80 = arith.addf %76, %79 : vector<32x32xf32>
    %81 = vector.shape_cast %80 : vector<32x32xf32> to vector<2x16x32xf32>
    %c0_48 = arith.constant 0 : index
    %c0_49 = arith.constant 0 : index
    %c0_50 = arith.constant 0 : index
    %82 = vector.load %arg10[%c0_48, %c0_49, %c0_50] : memref<2x16x32xf32, #tpu.memory_space<vmem>>, vector<2x16x32xf32>
    %83 = arith.addf %82, %81 : vector<2x16x32xf32>
    %c0_51 = arith.constant 0 : index
    %c0_52 = arith.constant 0 : index
    %c0_53 = arith.constant 0 : index
    %84 = vector.load %arg10[%c0_51, %c0_52, %c0_53] : memref<2x16x32xf32, #tpu.memory_space<vmem>>, vector<2x16x32xf32>
    tpu.vector_store %arg10[%c0_51, %c0_52, %c0_53], %83 {strides = array<i32>} : memref<2x16x32xf32, #tpu.memory_space<vmem>>, vector<2x16x32xf32>,
    %85 = arith.subf %3, %81 : vector<2x16x32xf32>
    %c0_54 = arith.constant 0 : index
    %c0_55 = arith.constant 0 : index
    %c0_56 = arith.constant 0 : index
    %86 = vector.load %arg14[%c0_54, %c0_55, %c0_56] : memref<2x16x32xf32, #tpu.memory_space<vmem>>, vector<2x16x32xf32>
    tpu.vector_store %arg14[%c0_54, %c0_55, %c0_56], %85 {strides = array<i32>} : memref<2x16x32xf32, #tpu.memory_space<vmem>>, vector<2x16x32xf32>,
    %c0_i32_57 = arith.constant 0 : i32
    %87 = arith.cmpi eq, %arg0, %c0_i32_57 : i32
    %88 = arith.extui %87 : i1 to i32
    %c0_i32_58 = arith.constant 0 : i32
    %89 = arith.cmpi ne, %88, %c0_i32_58 : i32
    scf.if %89 {
      %c0_62 = arith.constant 0 : index
      %c0_63 = arith.constant 0 : index
      %c0_64 = arith.constant 0 : index
      %99 = vector.load %arg10[%c0_62, %c0_63, %c0_64] : memref<2x16x32xf32, #tpu.memory_space<vmem>>, vector<2x16x32xf32>
      %c0_65 = arith.constant 0 : index
      %c0_66 = arith.constant 0 : index
      %c0_67 = arith.constant 0 : index
      %c0_68 = arith.constant 0 : index
      %100 = vector.load %arg15[%c0_65, %c0_66, %c0_67, %c0_68] : memref<2x2x16x32xf32, #tpu.memory_space<vmem>>, vector<1x2x16x32xf32>
      %101 = vector.shape_cast %100 : vector<1x2x16x32xf32> to vector<2x16x32xf32>
      %102 = vector.shape_cast %99 : vector<2x16x32xf32> to vector<1x2x16x32xf32>
      tpu.vector_store %arg15[%c0_65, %c0_66, %c0_67, %c0_68], %102 {strides = array<i32>} : memref<2x2x16x32xf32, #tpu.memory_space<vmem>>, vector<1x2x16x32xf32>,
    } else {
    }
    %c4_i32 = arith.constant 4 : i32
    %90 = arith.cmpi eq, %arg0, %c4_i32 : i32
    %91 = arith.extui %90 : i1 to i32
    %c0_i32_59 = arith.constant 0 : i32
    %92 = arith.cmpi ne, %91, %c0_i32_59 : i32
    scf.if %92 {
      %c0_62 = arith.constant 0 : index
      %c0_63 = arith.constant 0 : index
      %c0_64 = arith.constant 0 : index
      %99 = vector.load %arg10[%c0_62, %c0_63, %c0_64] : memref<2x16x32xf32, #tpu.memory_space<vmem>>, vector<2x16x32xf32>
      %c0_65 = arith.constant 0 : index
      %c0_66 = arith.constant 0 : index
      %c0_67 = arith.constant 0 : index
      %c0_68 = arith.constant 0 : index
      %100 = vector.load %arg15[%c0_65, %c0_66, %c0_67, %c0_68] : memref<2x2x16x32xf32, #tpu.memory_space<vmem>>, vector<1x2x16x32xf32>
      %101 = vector.shape_cast %100 : vector<1x2x16x32xf32> to vector<2x16x32xf32>
      %102 = arith.subf %99, %101 : vector<2x16x32xf32>
      %103 = arith.mulf %102, %102 : vector<2x16x32xf32>
      %104 = vector.shape_cast %103 : vector<2x16x32xf32> to vector<32x32xf32>
      %cst_69 = arith.constant dense<0.000000e+00> : vector<32xf32>
      %105 = vector.multi_reduction <add>, %104, %cst_69 [1] : vector<32x32xf32> to vector<32xf32>
      %106 = vector.shape_cast %105 : vector<32xf32> to vector<32x1xf32>
      %cst_70 = arith.constant dense<0.000000e+00> : vector<1xf32>
      %107 = vector.multi_reduction <add>, %106, %cst_70 [0] : vector<32x1xf32> to vector<1xf32>
      %108 = vector.shape_cast %107 : vector<1xf32> to vector<1x1xf32>
      %cst_71 = arith.constant 9.765625E-4 : f32
      %109 = vector.broadcast %cst_71 : f32 to vector<1x1xf32>
      %110 = arith.mulf %108, %109 : vector<1x1xf32>
      %c1 = arith.constant 1 : index
      %c0_72 = arith.constant 0 : index
      %111 = vector.load %arg13[%c1, %c0_72] : memref<3x1xf32, #tpu.memory_space<vmem>>, vector<1x1xf32>
      tpu.vector_store %arg13[%c1, %c0_72], %110 {strides = array<i32>} : memref<3x1xf32, #tpu.memory_space<vmem>>, vector<1x1xf32>,
    } else {
    }
    %c1_i32 = arith.constant 1 : i32
    %93 = arith.cmpi eq, %arg0, %c1_i32 : i32
    %94 = arith.extui %93 : i1 to i32
    %c0_i32_60 = arith.constant 0 : i32
    %95 = arith.cmpi ne, %94, %c0_i32_60 : i32
    scf.if %95 {
      %c0_62 = arith.constant 0 : index
      %c0_63 = arith.constant 0 : index
      %c0_64 = arith.constant 0 : index
      %99 = vector.load %arg10[%c0_62, %c0_63, %c0_64] : memref<2x16x32xf32, #tpu.memory_space<vmem>>, vector<2x16x32xf32>
      %c1 = arith.constant 1 : index
      %c0_65 = arith.constant 0 : index
      %c0_66 = arith.constant 0 : index
      %c0_67 = arith.constant 0 : index
      %100 = vector.load %arg15[%c1, %c0_65, %c0_66, %c0_67] : memref<2x2x16x32xf32, #tpu.memory_space<vmem>>, vector<1x2x16x32xf32>
      %101 = vector.shape_cast %100 : vector<1x2x16x32xf32> to vector<2x16x32xf32>
      %102 = vector.shape_cast %99 : vector<2x16x32xf32> to vector<1x2x16x32xf32>
      tpu.vector_store %arg15[%c1, %c0_65, %c0_66, %c0_67], %102 {strides = array<i32>} : memref<2x2x16x32xf32, #tpu.memory_space<vmem>>, vector<1x2x16x32xf32>,
    } else {
    }
    %c3_i32 = arith.constant 3 : i32
    %96 = arith.cmpi eq, %arg0, %c3_i32 : i32
    %97 = arith.extui %96 : i1 to i32
    %c0_i32_61 = arith.constant 0 : i32
    %98 = arith.cmpi ne, %97, %c0_i32_61 : i32
    scf.if %98 {
      %c0_62 = arith.constant 0 : index
      %c0_63 = arith.constant 0 : index
      %c0_64 = arith.constant 0 : index
      %99 = vector.load %arg10[%c0_62, %c0_63, %c0_64] : memref<2x16x32xf32, #tpu.memory_space<vmem>>, vector<2x16x32xf32>
      %c1 = arith.constant 1 : index
      %c0_65 = arith.constant 0 : index
      %c0_66 = arith.constant 0 : index
      %c0_67 = arith.constant 0 : index
      %100 = vector.load %arg15[%c1, %c0_65, %c0_66, %c0_67] : memref<2x2x16x32xf32, #tpu.memory_space<vmem>>, vector<1x2x16x32xf32>
      %101 = vector.shape_cast %100 : vector<1x2x16x32xf32> to vector<2x16x32xf32>
      %102 = arith.subf %99, %101 : vector<2x16x32xf32>
      %103 = arith.mulf %102, %102 : vector<2x16x32xf32>
      %104 = vector.shape_cast %103 : vector<2x16x32xf32> to vector<32x32xf32>
      %cst_68 = arith.constant dense<0.000000e+00> : vector<32xf32>
      %105 = vector.multi_reduction <add>, %104, %cst_68 [1] : vector<32x32xf32> to vector<32xf32>
      %106 = vector.shape_cast %105 : vector<32xf32> to vector<32x1xf32>
      %cst_69 = arith.constant dense<0.000000e+00> : vector<1xf32>
      %107 = vector.multi_reduction <add>, %106, %cst_69 [0] : vector<32x1xf32> to vector<1xf32>
      %108 = vector.shape_cast %107 : vector<1xf32> to vector<1x1xf32>
      %cst_70 = arith.constant 9.765625E-4 : f32
      %109 = vector.broadcast %cst_70 : f32 to vector<1x1xf32>
      %110 = arith.mulf %108, %109 : vector<1x1xf32>
      %c2 = arith.constant 2 : index
      %c0_71 = arith.constant 0 : index
      %111 = vector.load %arg13[%c2, %c0_71] : memref<3x1xf32, #tpu.memory_space<vmem>>, vector<1x1xf32>
      tpu.vector_store %arg13[%c2, %c0_71], %110 {strides = array<i32>} : memref<3x1xf32, #tpu.memory_space<vmem>>, vector<1x1xf32>,
    } else {
    }
    return
  }
  func.func @transform_0(%arg0: i32) -> (i32, i32, i32) {
    %c0_i32 = arith.constant 0 : i32
    %c0_i32_0 = arith.constant 0 : i32
    %c0_i32_1 = arith.constant 0 : i32
    %c0_i32_2 = arith.constant 0 : i32
    return %c0_i32, %c0_i32_0, %c0_i32_1 : i32, i32, i32
  }
  func.func @transform_1(%arg0: i32) -> (i32, i32, i32) {
    %c0_i32 = arith.constant 0 : i32
    %c0_i32_0 = arith.constant 0 : i32
    %c0_i32_1 = arith.constant 0 : i32
    return %arg0, %c0_i32, %c0_i32_0 : i32, i32, i32
  }
  func.func @transform_2(%arg0: i32) -> (i32, i32, i32) {
    %c0_i32 = arith.constant 0 : i32
    %c0_i32_0 = arith.constant 0 : i32
    %c0_i32_1 = arith.constant 0 : i32
    return %arg0, %c0_i32, %c0_i32_0 : i32, i32, i32
  }
  func.func @transform_3(%arg0: i32) -> (i32, i32, i32) {
    %c0_i32 = arith.constant 0 : i32
    %c0_i32_0 = arith.constant 0 : i32
    %c0_i32_1 = arith.constant 0 : i32
    return %arg0, %c0_i32, %c0_i32_0 : i32, i32, i32
  }
  func.func @transform_4(%arg0: i32) -> (i32, i32, i32) {
    %c0_i32 = arith.constant 0 : i32
    %c0_i32_0 = arith.constant 0 : i32
    %c0_i32_1 = arith.constant 0 : i32
    return %arg0, %c0_i32, %c0_i32_0 : i32, i32, i32
  }
  func.func @transform_5(%arg0: i32) -> (i32, i32, i32) {
    %c0_i32 = arith.constant 0 : i32
    %c0_i32_0 = arith.constant 0 : i32
    %c0_i32_1 = arith.constant 0 : i32
    return %arg0, %c0_i32, %c0_i32_0 : i32, i32, i32
  }
  func.func @transform_6(%arg0: i32) -> (i32, i32, i32) {
    %c0_i32 = arith.constant 0 : i32
    %c0_i32_0 = arith.constant 0 : i32
    %c0_i32_1 = arith.constant 0 : i32
    return %arg0, %c0_i32, %c0_i32_0 : i32, i32, i32
  }
  func.func @transform_7(%arg0: i32) -> (i32, i32, i32) {
    %c0_i32 = arith.constant 0 : i32
    %c0_i32_0 = arith.constant 0 : i32
    %c0_i32_1 = arith.constant 0 : i32
    return %arg0, %c0_i32, %c0_i32_0 : i32, i32, i32
  }
  func.func @transform_8(%arg0: i32) -> (i32, i32, i32) {
    %c0_i32 = arith.constant 0 : i32
    %c0_i32_0 = arith.constant 0 : i32
    %c0_i32_1 = arith.constant 0 : i32
    return %arg0, %c0_i32, %c0_i32_0 : i32, i32, i32
  }
  func.func @transform_9(%arg0: i32) -> (i32, i32, i32) {
    %c0_i32 = arith.constant 0 : i32
    %c0_i32_0 = arith.constant 0 : i32
    %c0_i32_1 = arith.constant 0 : i32
    %c0_i32_2 = arith.constant 0 : i32
    return %c0_i32, %c0_i32_0, %c0_i32_1 : i32, i32, i32
  }
  func.func @transform_10(%arg0: i32) -> (i32, i32, i32) {
    %c0_i32 = arith.constant 0 : i32
    %c0_i32_0 = arith.constant 0 : i32
    %c0_i32_1 = arith.constant 0 : i32
    return %arg0, %c0_i32, %c0_i32_0 : i32, i32, i32
  }
  func.func @transform_11(%arg0: i32) -> (i32, i32, i32, i32) {
    %c0_i32 = arith.constant 0 : i32
    %c0_i32_0 = arith.constant 0 : i32
    %c0_i32_1 = arith.constant 0 : i32
    %c0_i32_2 = arith.constant 0 : i32
    return %arg0, %c0_i32, %c0_i32_0, %c0_i32_1 : i32, i32, i32, i32
  }
  func.func @transform_12(%arg0: i32) -> (i32, i32) {
    %c0_i32 = arith.constant 0 : i32
    %c0_i32_0 = arith.constant 0 : i32
    %c0_i32_1 = arith.constant 0 : i32
    return %c0_i32, %c0_i32_0 : i32, i32
  }
}

</mosaic_0001>

<bundles_post_ra>
// kernel: wavescale_rvq_forward.1
= control target key start
LH: loop header
LB: loop body
LE: loop exit
PB: predicated region body
PF: predicated region fallthrough
CT: control target
= control target key end

     0   :  { %s1938_s0 = inlined_call_operand.vmem [shape: f32[2,16,32], index: 0, kind: input, shape index: {}]   ;;  %s1939_s1 = inlined_call_operand.vmem [shape: bf16[5,32,8], index: 1, kind: input, shape index: {}]   ;;  %s1940_s2 = inlined_call_operand.vmem [shape: f32[5,1,8], index: 2, kind: input, shape index: {}]   ;;  %s1941_s3 = inlined_call_operand.vmem [shape: bf16[5,8,32], index: 3, kind: input, shape index: {}]   ;;  %s1942_s4 = inlined_call_operand.vmem [shape: f32[5,1,32], index: 4, kind: input, shape index: {}]   ;;  %s1943_s5 = inlined_call_operand.vmem [shape: f32[5,64,8], index: 5, kind: input, shape index: {}]   ;;  %s1944_s6 = inlined_call_operand.vmem [shape: bf16[5,8,64], index: 6, kind: input, shape index: {}]   ;;  %s1945_s7 = inlined_call_operand.vmem [shape: bf16[5,16,16], index: 7, kind: input, shape index: {}]   ;;  %s1946_s8 = inlined_call_operand.vmem [shape: bf16[5,16,16], index: 8, kind: input, shape index: {}]   ;;  %s1947_s9 = inlined_call_operand.hbm [shape: f32[2,16,32], index: 9, kind: output, shape index: {0}]   ;;  %s1948_s10 = inlined_call_operand.vmem [shape: s32[5,2,16], index: 10, kind: output, shape index: {1}]   ;;  %s1949_s11 = inlined_call_operand.vmem [shape: f32[5,2,8,16], index: 11, kind: output, shape index: {2}]   ;;  %s1950_s12 = inlined_call_operand.vmem [shape: f32[3,1], index: 12, kind: output, shape index: {3}]  }
   0x1   :  { %1952 = sst [smem:[#allocation8_spill]] %s1939_s1 }
   0x2   :  { %1953 = sst [smem:[#allocation9_spill]] %s1941_s3 }
   0x3   :  { %1954 = sst [smem:[#allocation10_spill]] %s1947_s9 }
   0x4   :  { %18 = vsyncpa [#allocation5], 0  ;;  %s1708_s21 = smov 0  }
   0x5 LB: > { %1955 = sst [smem:[#allocation7_spill]] %s1636_s21  ;;  %s1714_s22 = sadd.s32 4294967295, %s1636_s21   ;;  %s1636_s21 = sphi %s1708_s21, %s24_s21  }
   0x6   : > { %p1504_p0 = scmp.ge.s32.totalorder %s1636_s21, 1  ;;  %p424_p1 = scmp.lt.s32.totalorder %s1636_s21, 6 }
   0x8   : > { %p425_p2 = pnand %p1504_p0, %p424_p1 }
   0x9   : > { %p499_p3 = scmp.lt.s32.totalorder (!%p425_p2), %s1714_s22, 4  ;;  %s1956_s1 = sld [smem:[#allocation8_spill]] (!%p425_p2) }
   0xa   : > { %428 = sbr.rel (%p425_p2) target bundleno = 2273 (0x8e1), region = 56  ;;  %s1957_s3 = sld [smem:[#allocation9_spill]] (!%p425_p2) }
   0xb   : > { %p1518_p4 = scmp.ne.s32.totalorder (!%p425_p2), %s1714_s22, 0 }
   0xf   : > { %s1720_s23 = scalar_select %p499_p3, %s1714_s22, 4 }
  0x11   : > { %s1559_s24 = sshll.u32 %s1720_s23, 4  ;;  %s1507_s13 = sshll.u32 %s1720_s23, 2 }
  0x12   : > { %s1730_s30 = scalar_lea.vmem %s1956_s1, %s1559_s24  ;;  %s1736_s16 = scalar_lea.vmem %s1957_s3, %s1507_s13 }
  0x13   : > { %s1560_s20 = sshll.u32 %s1720_s23, 6  ;;  %s1746_s25 = scalar_lea.vmem %s1944_s6, %s1507_s13 }
  0x14   : > { %s1751_s29 = scalar_lea.vmem %s1943_s5, %s1560_s20  ;;  %s1561_s27 = sshll.u32 %s1720_s23, 3 }
  0x15   : > { %s1757_s15 = scalar_lea.vmem %s1945_s7, %s1561_s27  ;;  %s1762_s18 = scalar_lea.vmem %s1946_s8, %s1561_s27 }
  0x16   : > { %s1515_s19 = sshll.u32 %s1720_s23, 1  ;;  %s1768_s13 = scalar_lea.vmem %s1949_s11, %s1559_s24 }
  0x17   : > { %s1773_s28 = scalar_lea.vmem %s1948_s10, %s1515_s19  ;;  %546 = sbr.rel (%p1518_p4) target bundleno = 38 (0x26), region = 60 }
  0x1c   : > { %v547_v0 = vld [vmem:[%s1938_s0] sm:$0xff]  ;;  %vm551_vm0 = vcmask 261120   ;;  %v548_v1 = vld [vmem:[%s1938_s0 + $0x8] sm:$0xff]  ;;  %v549_v2 = vld [vmem:[%s1938_s0 + $0x10] sm:$0xff]  ;;  %v1638_v4 = vmov 0.0   ;;  %vm560_vm1 = vcmask 2048  }
  0x1d   : > { %552 = vst.msk [vmem:[#allocation2] sm:$0xff] %vm551_vm0, %v547_v0  ;;  %v550_v3 = vld [vmem:[%s1938_s0 + $0x18] sm:$0xff] }
  0x1e   : > { %553 = vst.msk [vmem:[#allocation2 + $0x8] sm:$0xff] %vm551_vm0, %v548_v1 }
  0x1f   : > { %554 = vst.msk [vmem:[#allocation2 + $0x10] sm:$0xff] %vm551_vm0, %v549_v2 }
  0x20   : > { %555 = vst.msk [vmem:[#allocation2 + $0x18] sm:$0xff] %vm551_vm0, %v550_v3 }
  0x21   : > { %556 = vst.msk [vmem:[#allocation4] sm:$0xff] %vm551_vm0, %v1638_v4 }
  0x22   : > { %557 = vst.msk [vmem:[#allocation4 + $0x8] sm:$0xff] %vm551_vm0, %v1638_v4 }
  0x23   : > { %558 = vst.msk [vmem:[#allocation4 + $0x10] sm:$0xff] %vm551_vm0, %v1638_v4 }
  0x24   : > { %559 = vst.msk [vmem:[#allocation4 + $0x18] sm:$0xff] %vm551_vm0, %v1638_v4 }
  0x25   : > { %561 = vst.msk [vmem:[%s1950_s12] sm:$0x7] %vm560_vm1, %v1638_v4 }
  0x26 PF: > { %v1565_v5 = vld [vmem:[%s1730_s30 + $0x8] sm:$0xff]  ;;  %v1564_v6 = vld [vmem:[%s1730_s30] sm:$0xff]  ;;  %vm588_vm2 = vcmask 261120   ;;  %v1802_v10 = vld [vmem:[#allocation2 + $0x10] sm:$0xff]  ;;  %s1958_s1 = scalar_lea.vmem %s1940_s2, %s1720_s23  ;;  %vm678_vm3 = vcmask 130048   ;;  %vm781_vm4 = vcmask 1043456   ;;  %v817_v44 = vlaneseq }
  0x27   : > { %v1795_v7 = vld [vmem:[#allocation2] sm:$0xff]  ;;  %601 = vmatpush.bf16.msra.mxu0 %v1565_v5  ;;  %v1797_v8 = vld [vmem:[#allocation2 + $0x8] sm:$0xff]  ;;  %v1804_v11 = vld [vmem:[#allocation2 + $0x18] sm:$0xff]  ;;  %vm774_vm5 = vcmask 64512   ;;  %vm804_vm6 = vcmask 523264   ;;  %vm890_vm0 = vcmask 130112  }
  0x28   : > { %v566_v9 = vpack.c.bf16 %v1797_v8, %v1795_v7  ;;  %v567_v12 = vpack.c.bf16 %v1804_v11, %v1802_v10  ;;  %v1566_v13 = vld [vmem:[%s1757_s15] sm:$0xff]  ;;  %v1836_v45 = vand.u32 127, %v817_v44  ;;  %v918_v2 = vld [vmem:[%s1751_s29 + $0x38] sm:$0xff]  ;;  %v917_v3 = vld [vmem:[%s1751_s29 + $0x30] sm:$0xff] }
  0x29   : > { %v1596_v14 = vld [vmem:[%s1958_s1] ss:$0 sm:$0xff]  ;;  %700 = vmatpush.bf16.msra.mxu2 %v1566_v13  ;;  %939 = vmatpush.msra.mxu3 %v918_v2  ;;  %v916_v5 = vld [vmem:[%s1751_s29 + $0x28] sm:$0xff]  ;;  %v914_v13 = vld [vmem:[%s1751_s29 + $0x18] sm:$0xff] }
  0x2a   : > { %v773_v26 = vld [vmem:[%s1746_s25] sm:$0xf] }
  0x2b   : > { %602 = vmatpush.bf16.msra.mxu0 %v1564_v6  ;;  %v783_v27 = vsel %vm781_vm4, %v773_v26, 0  ;;  %940 = vmatpush.msra.mxu3 %v917_v3  ;;  %v915_v6 = vld [vmem:[%s1751_s29 + $0x20] sm:$0xff] }
  0x2d   : > { %792 = vmatpush.bf16.msrb.mxu2 %v783_v27  ;;  %941 = vmatpush.msra.mxu3 %v916_v5 }
  0x2e   : > { %1527 = vmatmul.msk.bf16.vlgmr.msra.gmra.mxu0 %vm588_vm2, %v566_v9 }
  0x2f   : > { %942 = vmatpush.msra.mxu3 %v915_v6 }
  0x31   : > { %943 = vmatpush.msra.mxu3 %v914_v13 }
  0x3e   : > { %1528 = vmatmul.msk.bf16.gmra.mxu0 %vm588_vm2, %v567_v12 }
  0xab   : > { %v604_v15 = vpop.f32.mrf.mxu0 }
  0xac   : > { %v605_v16 = vadd.f32 %v1596_v14, %v604_v15 }
  0xae   : > { %614 = vxpose.xlu0.b32.start [1/2] (short) (narrow) %v605_v16, 8 }
  0xb3   : > { %v606_v17 = vpop.f32.mrf.mxu0 }
  0xb4   : > { %v607_v18 = vadd.f32 %v1596_v14, %v606_v17 }
  0xb6   : > { %615 = vxpose.xlu0.b32.end [2/2] (short) (narrow) %v607_v18, 8 }
  0xbb   : > { %v609_v19 = vpop.f32.mrf.mxu0 }
  0xbc   : > { %v610_v20 = vadd.f32 %v1596_v14, %v609_v19 }
  0xbe   : > { %646 = vxpose.xlu1.b32.start [1/2] (short) (narrow) %v610_v20, 8 }
  0xc3   : > { %v611_v21 = vpop.f32.mrf.mxu0 }
  0xc4   : > { %v612_v22 = vadd.f32 %v1596_v14, %v611_v21 }
  0xc6   : > { %647 = vxpose.xlu1.b32.end [2/2] (short) (narrow) %v612_v22, 8 }
 0x152   : > { %v1815_v23 = vpop.trf.xlu0 }
 0x153   : > { %679 = vst.msk [vmem:[%s1768_s13] sm:$0xff] %vm678_vm3, %v1815_v23 }
 0x162   : > { %v1820_v24 = vpop.trf.xlu1 }
 0x163   : > { %680 = vst.msk [vmem:[%s1768_s13 + $0x8] sm:$0xff] %vm678_vm3, %v1820_v24  ;;  %v681_v25 = vpack.c.bf16 %v1820_v24, %v1815_v23 }
 0x165   : > { %1533 = vmatmul.msk.bf16.vlgmr.msra.gmra.mxu2 %vm678_vm3, %v681_v25 }
 0x1e8   : > { %v702_v28 = vpop.f32.mrf.mxu2 }
 0x1e9   : > { %707 = vxpose.xlu2.b32.start.end [1/1] (short) (narrow) %v702_v28, 16 }
 0x1f0   : > { %v704_v29 = vpop.f32.mrf.mxu2 }
 0x1f9   : > { %739 = vxpose.xlu2.b32.start.end [1/1] (short) (narrow) %v704_v29, 16  ;;  %v913_v29 = vld [vmem:[%s1751_s29 + $0x10] sm:$0xff] }
 0x1fa   : > { %944 = vmatpush.msra.mxu3 %v913_v29 }
 0x282   : > { %v723_v30 = vpop.trf.xlu2 }
 0x28a   : > { %v724_v31 = vpop.trf.xlu2 }
 0x28b   : > { %v771_v32 = vpack.c.bf16 %v724_v31, %v723_v30  ;;  %v912_v30 = vld [vmem:[%s1751_s29 + $0x8] sm:$0xff]  ;;  %v911_v31 = vld [vmem:[%s1751_s29] sm:$0xff] }
 0x28c   : > { %945 = vmatpush.msra.mxu3 %v912_v30 }
 0x28d   : > { %1534 = vmatmul.msk.bf16.vlgmr.msrb.gmra.mxu2 %vm774_vm5, %v771_v32 }
 0x28e   : > { %946 = vmatpush.msra.mxu3 %v911_v31 }
 0x292   : > { %v755_v33 = vpop.trf.xlu2 }
 0x29a   : > { %v756_v34 = vpop.trf.xlu2 }
 0x29b   : > { %v772_v35 = vpack.c.bf16 %v756_v34, %v755_v33 }
 0x29d   : > { %1535 = vmatmul.msk.bf16.gmra.mxu2 %vm774_vm5, %v772_v35 }
 0x310   : > { %v794_v36 = vpop.f32.mrf.mxu2 }
 0x311   : > { %v805_v37 = vsel %vm804_vm6, %v794_v36, -inf }
 0x312   : > { %806 = vmax.xlane.f32.xlu0 %v805_v37 }
 0x318   : > { %v796_v38 = vpop.f32.mrf.mxu2 }
 0x319   : > { %v808_v39 = vsel %vm804_vm6, %v796_v38, -inf }
 0x31a   : > { %809 = vmax.xlane.f32.xlu1 %v808_v39 }
 0x320   : > { %v799_v40 = vpop.f32.mrf.mxu2 }
 0x321   : > { %v811_v41 = vsel %vm804_vm6, %v799_v40, -inf }
 0x322   : > { %812 = vmax.xlane.f32.xlu2 %v811_v41 }
 0x328   : > { %v801_v42 = vpop.f32.mrf.mxu2 }
 0x329   : > { %v814_v43 = vsel %vm804_vm6, %v801_v42, -inf }
 0x32a   : > { %815 = vmax.xlane.f32.xlu1 %v814_v43 }
 0x385   : > { %v807_v46 = vpop.xlane.xlu0 %806 }
 0x386   : > { %vm819_vm7 = vcmp.ge.f32.partialorder %v794_v36, %v807_v46 }
 0x387   : > { %v823_v47 = vsel %vm819_vm7, %v1836_v45, 64 }
 0x388   : > { %v827_v48 = vsel %vm804_vm6, %v823_v47, 2147483647 }
 0x389   : > { %v829_v49 = vshra.s32 %v827_v48, 16  ;;  %v828_v4 = vand.u32 65535, %v827_v48 }
 0x38b   : > { %v831_v50 = vcvt.s32.f32 %v829_v49  ;;  %v830_v12 = vcvt.s32.f32 %v828_v4 }
 0x38d   : > { %v810_v51 = vpop.xlane.xlu1 %809  ;;  %832 = vmin.xlane.f32.xlu1 %v831_v50 }
 0x38e   : > { %vm820_vm8 = vcmp.ge.f32.partialorder %v796_v38, %v810_v51  ;;  %v1639_v38 = vmov 0.0  }
 0x38f   : > { %v824_v52 = vsel %vm820_vm8, %v1836_v45, 64  ;;  %vm895_vm8 = vcmask 1041409  }
 0x390   : > { %v842_v53 = vsel %vm804_vm6, %v824_v52, 2147483647 }
 0x391   : > { %v844_v54 = vshra.s32 %v842_v53, 16  ;;  %v843_v15 = vand.u32 65535, %v842_v53 }
 0x393   : > { %v846_v55 = vcvt.s32.f32 %v844_v54  ;;  %v845_v17 = vcvt.s32.f32 %v843_v15 }
 0x395   : > { %v813_v56 = vpop.xlane.xlu2 %812  ;;  %847 = vmin.xlane.f32.xlu1 %v846_v55 }
 0x396   : > { %vm821_vm9 = vcmp.ge.f32.partialorder %v799_v40, %v813_v56 }
 0x397   : > { %v825_v57 = vsel %vm821_vm9, %v1836_v45, 64 }
 0x398   : > { %v857_v58 = vsel %vm804_vm6, %v825_v57, 2147483647 }
 0x399   : > { %v859_v59 = vshra.s32 %v857_v58, 16  ;;  %v858_v19 = vand.u32 65535, %v857_v58 }
 0x39b   : > { %v861_v60 = vcvt.s32.f32 %v859_v59  ;;  %v860_v21 = vcvt.s32.f32 %v858_v19 }
 0x39d   : > { %862 = vmin.xlane.f32.xlu0 %v861_v60  ;;  %v816_v61 = vpop.xlane.xlu1 %815 }
 0x39e   : > { %vm822_vm10 = vcmp.ge.f32.partialorder %v801_v42, %v816_v61  ;;  %v888_v42 = vadd.s32 4294967288, %v1836_v45 }
 0x39f   : > { %v826_v62 = vsel %vm822_vm10, %v1836_v45, 64  ;;  %vm897_vm10 = vcmask 123904  }
 0x3a0   : > { %v872_v63 = vsel %vm804_vm6, %v826_v62, 2147483647 }
 0x3a1   : > { %v874_v0 = vshra.s32 %v872_v63, 16  ;;  %v873_v25 = vand.u32 65535, %v872_v63 }
 0x3a3   : > { %v876_v1 = vcvt.s32.f32 %v874_v0  ;;  %v875_v27 = vcvt.s32.f32 %v873_v25 }
 0x3a5   : > { %877 = vmin.xlane.f32.xlu1 %v876_v1 }
 0x400   : > { %v833_v9 = vpop.xlane.xlu1 %832 }
 0x401   : > { %vm834_vm11 = vcmp.eq.f32.partialorder %v831_v50, %v833_v9  ;;  %v839_v32 = vcvt.f32.s32 %v833_v9 }
 0x402   : > { %v835_v14 = vsel %vm834_vm11, %v830_v12, inf  ;;  %v1567_v12 = vld [vmem:[%s1762_s18] sm:$0xff] }
 0x403   : > { %836 = vmin.xlane.f32.xlu0 %v835_v14  ;;  %v840_v34 = vshll.u32 %v839_v32, 16  ;;  %1043 = vmatpush.bf16.msra.mxu1 %v1567_v12 }
 0x408   : > { %v848_v16 = vpop.xlane.xlu1 %847 }
 0x409   : > { %vm849_vm12 = vcmp.eq.f32.partialorder %v846_v55, %v848_v16  ;;  %v854_v37 = vcvt.f32.s32 %v848_v16 }
 0x40a   : > { %v850_v18 = vsel %vm849_vm12, %v845_v17, inf }
 0x40b   : > { %851 = vmin.xlane.f32.xlu1 %v850_v18  ;;  %v855_v41 = vshll.u32 %v854_v37, 16  ;;  %v1138_v18 = vld [vmem:[%s1736_s16] sm:$0xf] }
 0x40c   : > { %v1150_v19 = vsel %vm781_vm4, %v1138_v18, 0 }
 0x40d   : > { %1159 = vmatpush.bf16.msrb.mxu1 %v1150_v19 }
 0x410   : > { %v863_v20 = vpop.xlane.xlu0 %862 }
 0x411   : > { %vm864_vm13 = vcmp.eq.f32.partialorder %v861_v60, %v863_v20  ;;  %v869_v46 = vcvt.f32.s32 %v863_v20 }
 0x412   : > { %v865_v22 = vsel %vm864_vm13, %v860_v21, inf }
 0x413   : > { %866 = vmin.xlane.f32.xlu0 %v865_v22  ;;  %v870_v52 = vshll.u32 %v869_v46, 16 }
 0x418   : > { %v878_v26 = vpop.xlane.xlu1 %877 }
 0x419   : > { %vm879_vm14 = vcmp.eq.f32.partialorder %v876_v1, %v878_v26  ;;  %v884_v55 = vcvt.f32.s32 %v878_v26 }
 0x41a   : > { %v880_v28 = vsel %vm879_vm14, %v875_v27, inf }
 0x41b   : > { %881 = vmin.xlane.f32.xlu2 %v880_v28  ;;  %v885_v58 = vshll.u32 %v884_v55, 16 }
 0x476   : > { %v837_v33 = vpop.xlane.xlu0 %836 }
 0x477   : > { %v838_v35 = vcvt.f32.s32 %v837_v33 }
 0x479   : > { %v841_v36 = vadd.s32 %v840_v34, %v838_v35 }
 0x47b   : > { %vm899_vm15 = vcmp.eq.s32.totalorder %v1836_v45, %v841_v36  ;;  %v887_v47 = vperm.slane %v841_v36, %v1836_v45 }
 0x47c   : > { %v1536_v39 = vsel %vm899_vm15, 1.0, %v1639_v38 }
 0x47d   : > { %1540 = vmatmul.msk.f32.vlgmr.msra.gmra.mxu3 %vm804_vm6, %v1536_v39 }
 0x47e   : > { %v852_v40 = vpop.xlane.xlu1 %851 }
 0x47f   : > { %v853_v43 = vcvt.f32.s32 %v852_v40 }
 0x481   : > { %v856_v44 = vadd.s32 %v855_v41, %v853_v43  ;;  %v1068_v41 = vld [vmem:[%s1950_s12] sm:$0x1] }
 0x483   : > { %v889_v48 = vperm.slane %v856_v44, %v888_v42  ;;  %vm900_vm1 = vcmp.eq.s32.totalorder %v1836_v45, %v856_v44 }
 0x484   : > { %v1537_v49 = vsel %vm900_vm1, 1.0, %v1639_v38 }
 0x485   : > { %v891_v50 = vsel %vm890_vm0, %v889_v48, %v887_v47  ;;  %1541 = vmatmul.msk.f32.gmra.mxu3 %vm804_vm6, %v1537_v49  ;;  %v1171_v47 = vld [vmem:[#allocation4] sm:$0xff] }
 0x486   : > { %v867_v51 = vpop.xlane.xlu0 %866 }
 0x487   : > { %v868_v53 = vcvt.f32.s32 %v867_v51 }
 0x489   : > { %v871_v54 = vadd.s32 %v870_v52, %v868_v53  ;;  %v1172_v52 = vld [vmem:[#allocation4 + $0x8] sm:$0xff] }
 0x48b   : > { %vm901_vm7 = vcmp.eq.s32.totalorder %v1836_v45, %v871_v54  ;;  %v892_v61 = vperm.slane %v871_v54, %v1836_v45 }
 0x48c   : > { %v1538_v56 = vsel %vm901_vm7, 1.0, %v1639_v38 }
 0x48d   : > { %1542 = vmatmul.msk.f32.gmra.mxu3 %vm804_vm6, %v1538_v56 }
 0x48e   : > { %v882_v57 = vpop.xlane.xlu2 %881 }
 0x48f   : > { %v883_v59 = vcvt.f32.s32 %v882_v57  ;;  %v1173_v57 = vld [vmem:[#allocation4 + $0x10] sm:$0xff] }
 0x491   : > { %v886_v60 = vadd.s32 %v885_v58, %v883_v59 }
 0x493   : > { %v893_v62 = vperm.slane %v886_v60, %v888_v42  ;;  %vm902_vm9 = vcmp.eq.s32.totalorder %v1836_v45, %v886_v60 }
 0x494   : > { %v1539_v63 = vsel %vm902_vm9, 1.0, %v1639_v38 }
 0x495   : > { %v894_v0 = vsel %vm890_vm0, %v893_v62, %v892_v61  ;;  %1543 = vmatmul.msk.f32.gmra.mxu3 %vm804_vm6, %v1539_v63  ;;  %v1174_v61 = vld [vmem:[#allocation4 + $0x18] sm:$0xff] }
 0x496   : > { %v896_v1 = vsel %vm895_vm8, %v894_v0, %v891_v50 }
 0x497   : > { %898 = vst.msk [vmem:[%s1773_s28] sm:$0x3] %vm897_vm10, %v896_v1  ;;  %s1959_s28 = scalar_lea.vmem %s1942_s4, %s1720_s23 }
 0x498   : > { %v1597_v44 = vld [vmem:[%s1959_s28] ss:$0 sm:$0xff] }
 0x500   : > { %v948_v2 = vpop.f32.mrf.mxu3 }
 0x508   : > { %v951_v3 = vpop.f32.mrf.mxu3 }
 0x510   : > { %v954_v4 = vpop.f32.mrf.mxu3 }
 0x511   : > { %v1587_v5 = vpack.i.bf16 %v954_v4, %v948_v2 }
 0x513   : > { %1588 = vxpose.xlu1.b32.start [1/2] (short) (narrow) %v1587_v5, 8 }
 0x518   : > { %v957_v6 = vpop.f32.mrf.mxu3 }
 0x519   : > { %v1589_v9 = vpack.i.bf16 %v957_v6, %v951_v3 }
 0x51b   : > { %1590 = vxpose.xlu1.b32.end [2/2] (short) (narrow) %v1589_v9, 8 }
 0x5b7   : > { %v1591_v45 = vpop.trf.xlu1 }
 0x5b8   : > { %v1595_v13 = vunpack.i.h.bf16 %v1591_v45  ;;  %v1592_v14 = vunpack.i.l.bf16 %v1591_v45 }
 0x5ba   : > { %v1024_v15 = vpack.c.bf16 %v1595_v13, %v1592_v14 }
 0x5bc   : > { %1548 = vmatmul.msk.bf16.vlgmr.msra.gmra.mxu1 %vm678_vm3, %v1024_v15 }
 0x639   : > { %v1045_v16 = vpop.f32.mrf.mxu1 }
 0x63a   : > { %1072 = vxpose.xlu0.b32.start.end [1/1] (short) (narrow) %v1045_v16, 16  ;;  %v1050_v20 = vsub.f32 %v1815_v23, %v1045_v16 }
 0x63c   : > { %v1052_v21 = vmul.f32 %v1050_v20, %v1050_v20 }
 0x63e   : > { %v1054_v25 = vsel %vm678_vm3, %v1052_v21, 0.0 }
 0x641   : > { %v1047_v17 = vpop.f32.mrf.mxu1 }
 0x642   : > { %1104 = vxpose.xlu2.b32.start.end [1/1] (short) (narrow) %v1047_v17, 16  ;;  %v1051_v22 = vsub.f32 %v1820_v24, %v1047_v17 }
 0x644   : > { %v1053_v26 = vmul.f32 %v1051_v22, %v1051_v22 }
 0x646   : > { %v1057_v27 = vsel %vm678_vm3, %v1053_v26, 0.0  ;;  %vm1070_vm3 = vcmask 0  }
 0x6b3   : > { %1055 = vadd.xlane.f32.xlu0 %v1054_v25 }
 0x6bb   : > { %1058 = vadd.xlane.f32.xlu2 %v1057_v27 }
 0x6db   : > { %v1120_v31 = vpop.trf.xlu2 }
 0x6de   : > { %v1088_v28 = vpop.trf.xlu0 }
 0x6e3   : > { %v1121_v32 = vpop.trf.xlu2 }
 0x6e4   : > { %v1137_v33 = vpack.c.bf16 %v1121_v32, %v1120_v31 }
 0x6e6   : > { %v1089_v29 = vpop.trf.xlu0 }
 0x6e7   : > { %v1136_v30 = vpack.c.bf16 %v1089_v29, %v1088_v28 }
 0x6e9   : > { %1549 = vmatmul.msk.bf16.vlgmr.msrb.gmra.mxu1 %vm774_vm5, %v1136_v30 }
 0x6f9   : > { %1550 = vmatmul.msk.bf16.gmra.mxu1 %vm774_vm5, %v1137_v33 }
 0x726   : > { %v1056_v23 = vpop.xlane.xlu0 %1055 }
 0x72e   : > { %v1059_v24 = vpop.xlane.xlu2 %1058 }
 0x72f   : > { %v1060_v34 = vadd.f32 %v1059_v24, %v1056_v23 }
 0x731   : > { %v1061_v35 = vrot.slane %v1060_v34, 4 }
 0x733   : > { %v1062_v36 = vadd.f32 %v1061_v35, %v1060_v34 }
 0x735   : > { %v1063_v37 = vrot.slane %v1062_v36, 2 }
 0x737   : > { %v1064_v38 = vadd.f32 %v1063_v37, %v1062_v36 }
 0x739   : > { %v1065_v39 = vrot.slane %v1064_v38, 1 }
 0x73b   : > { %v1066_v40 = vadd.f32 %v1065_v39, %v1064_v38 }
 0x73d   : > { %v1067_v42 = vmul.f32 0.00390625, %v1066_v40 }
 0x73f   : > { %v1069_v43 = vadd.f32 %v1068_v41, %v1067_v42 }
 0x741   : > { %1071 = vst.msk [vmem:[%s1950_s12] sm:$0x1] %vm1070_vm3, %v1069_v43 }
 0x766   : > { %v1161_v46 = vpop.f32.mrf.mxu1 }
 0x767   : > { %v1162_v48 = vadd.f32 %v1597_v44, %v1161_v46 }
 0x769   : > { %v1175_v49 = vadd.f32 %v1171_v47, %v1162_v48  ;;  %v1183_v50 = vsub.f32 %v1795_v7, %v1162_v48 }
 0x76b   : > { %1179 = vst.msk [vmem:[#allocation4] sm:$0xff] %vm588_vm2, %v1175_v49 }
 0x76c   : > { %1187 = vst.msk [vmem:[#allocation2] sm:$0xff] %vm588_vm2, %v1183_v50 }
 0x76e   : > { %v1163_v51 = vpop.f32.mrf.mxu1 }
 0x76f   : > { %v1164_v53 = vadd.f32 %v1597_v44, %v1163_v51 }
 0x771   : > { %v1176_v54 = vadd.f32 %v1172_v52, %v1164_v53  ;;  %v1184_v55 = vsub.f32 %v1797_v8, %v1164_v53 }
 0x773   : > { %1180 = vst.msk [vmem:[#allocation4 + $0x8] sm:$0xff] %vm588_vm2, %v1176_v54 }
 0x774   : > { %1188 = vst.msk [vmem:[#allocation2 + $0x8] sm:$0xff] %vm588_vm2, %v1184_v55 }
 0x776   : > { %v1166_v56 = vpop.f32.mrf.mxu1 }
 0x777   : > { %v1167_v58 = vadd.f32 %v1597_v44, %v1166_v56 }
 0x779   : > { %v1177_v59 = vadd.f32 %v1173_v57, %v1167_v58  ;;  %v1185_v7 = vsub.f32 %v1802_v10, %v1167_v58 }
 0x77b   : > { %1181 = vst.msk [vmem:[#allocation4 + $0x10] sm:$0xff] %vm588_vm2, %v1177_v59 }
 0x77c   : > { %1189 = vst.msk [vmem:[#allocation2 + $0x10] sm:$0xff] %vm588_vm2, %v1185_v7 }
 0x77e   : > { %v1168_v60 = vpop.f32.mrf.mxu1 }
 0x77f   : > { %v1169_v62 = vadd.f32 %v1597_v44, %v1168_v60 }
 0x780   : > { %1193 = sbr.rel (%p1518_p4) target bundleno = 1932 (0x78c), region = 64 }
 0x781   : > { %v1178_v63 = vadd.f32 %v1174_v61, %v1169_v62  ;;  %v1186_v8 = vsub.f32 %v1804_v11, %v1169_v62 }
 0x783   : > { %1182 = vst.msk [vmem:[#allocation4 + $0x18] sm:$0xff] %vm588_vm2, %v1178_v63 }
 0x784   : > { %1190 = vst.msk [vmem:[#allocation2 + $0x18] sm:$0xff] %vm588_vm2, %v1186_v8 }
 0x785   : > { %v1194_v0 = vld [vmem:[#allocation4] sm:$0xff]  ;;  %v1195_v1 = vld [vmem:[#allocation4 + $0x8] sm:$0xff]  ;;  %v1196_v10 = vld [vmem:[#allocation4 + $0x10] sm:$0xff] }
 0x786   : > { %1198 = vst.msk [vmem:[#allocation3] sm:$0xff] %vm588_vm2, %v1194_v0 }
 0x787   : > { %1199 = vst.msk [vmem:[#allocation3 + $0x8] sm:$0xff] %vm588_vm2, %v1195_v1 }
 0x788   : > { %1200 = vst.msk [vmem:[#allocation3 + $0x10] sm:$0xff] %vm588_vm2, %v1196_v10 }
 0x78a   : > { %v1197_v2 = vld [vmem:[#allocation4 + $0x18] sm:$0xff] }
 0x78b   : > { %1201 = vst.msk [vmem:[#allocation3 + $0x18] sm:$0xff] %vm588_vm2, %v1197_v2 }
 0x78c PF: > { %p1552_p5 = scmp.ne.s32.totalorder %s1714_s22, 4 }
 0x78e   : > { %1205 = sbr.rel (%p1552_p5) target bundleno = 2091 (0x82b), region = 68 }
 0x793   : > { %v1206_v11 = vld [vmem:[#allocation4] sm:$0xff]  ;;  %v1208_v4 = vld [vmem:[#allocation4 + $0x10] sm:$0xff]  ;;  %v1207_v9 = vld [vmem:[#allocation4 + $0x8] sm:$0xff] }
 0x794   : > { %v1210_v3 = vld [vmem:[#allocation3] sm:$0xff]  ;;  %v1212_v6 = vld [vmem:[#allocation3 + $0x10] sm:$0xff]  ;;  %v1211_v12 = vld [vmem:[#allocation3 + $0x8] sm:$0xff] }
 0x795   : > { %v1214_v5 = vsub.f32 %v1206_v11, %v1210_v3  ;;  %v1216_v45 = vsub.f32 %v1208_v4, %v1212_v6  ;;  %v1209_v13 = vld [vmem:[#allocation4 + $0x18] sm:$0xff]  ;;  %v1215_v16 = vsub.f32 %v1207_v9, %v1211_v12 }
 0x796   : > { %v1213_v14 = vld [vmem:[#allocation3 + $0x18] sm:$0xff] }
 0x797   : > { %v1218_v15 = vmul.f32 %v1214_v5, %v1214_v5  ;;  %v1220_v17 = vmul.f32 %v1216_v45, %v1216_v45  ;;  %v1217_v18 = vsub.f32 %v1209_v13, %v1213_v14  ;;  %v1219_v21 = vmul.f32 %v1215_v16, %v1215_v16 }
 0x799   : > { %v1222_v19 = vsel %vm588_vm2, %v1218_v15, 0.0  ;;  %v1228_v20 = vsel %vm588_vm2, %v1220_v17, 0.0  ;;  %v1221_v22 = vmul.f32 %v1217_v18, %v1217_v18  ;;  %v1225_v25 = vsel %vm588_vm2, %v1219_v21, 0.0 }
 0x79a   : > { %1223 = vadd.xlane.f32.xlu0 %v1222_v19  ;;  %1229 = vadd.xlane.f32.xlu1 %v1228_v20 }
 0x79b   : > { %v1231_v26 = vsel %vm588_vm2, %v1221_v22, 0.0 }
 0x7a2   : > { %1226 = vadd.xlane.f32.xlu0 %v1225_v25  ;;  %1232 = vadd.xlane.f32.xlu1 %v1231_v26 }
 0x80d   : > { %v1224_v27 = vpop.xlane.xlu0 %1223  ;;  %v1230_v28 = vpop.xlane.xlu1 %1229 }
 0x815   : > { %v1227_v29 = vpop.xlane.xlu0 %1226  ;;  %v1233_v31 = vpop.xlane.xlu1 %1232 }
 0x816   : > { %v1234_v30 = vadd.f32 %v1227_v29, %v1224_v27 }
 0x818   : > { %v1235_v32 = vadd.f32 %v1234_v30, %v1230_v28 }
 0x81a   : > { %v1236_v33 = vadd.f32 %v1235_v32, %v1233_v31 }
 0x81c   : > { %v1237_v23 = vrot.slane %v1236_v33, 4 }
 0x81e   : > { %v1238_v24 = vadd.f32 %v1237_v23, %v1236_v33 }
 0x820   : > { %v1239_v34 = vrot.slane %v1238_v24, 2 }
 0x822   : > { %v1240_v35 = vadd.f32 %v1239_v34, %v1238_v24 }
 0x824   : > { %v1241_v36 = vrot.slane %v1240_v35, 1 }
 0x826   : > { %v1242_v37 = vadd.f32 %v1241_v36, %v1240_v35 }
 0x828   : > { %v1243_v38 = vmul.f32 0.0009765625, %v1242_v37 }
 0x82a   : > { %1244 = vst.msk [vmem:[%s1950_s12 + $0x1] sm:$0x1] %vm1070_vm3, %v1243_v38 }
 0x82b PF: > { %p1553_p6 = scmp.ne.s32.totalorder %s1714_s22, 1 }
 0x82d   : > { %1248 = sbr.rel (%p1553_p6) target bundleno = 2103 (0x837), region = 72 }
 0x832   : > { %v1249_v39 = vld [vmem:[#allocation4] sm:$0xff]  ;;  %v1250_v40 = vld [vmem:[#allocation4 + $0x8] sm:$0xff]  ;;  %v1251_v41 = vld [vmem:[#allocation4 + $0x10] sm:$0xff] }
 0x833   : > { %1254 = vst.msk [vmem:[#allocation3 + $0x20] sm:$0xff] %vm588_vm2, %v1249_v39  ;;  %v1252_v42 = vld [vmem:[#allocation4 + $0x18] sm:$0xff] }
 0x834   : > { %1255 = vst.msk [vmem:[#allocation3 + $0x28] sm:$0xff] %vm588_vm2, %v1250_v40 }
 0x835   : > { %1256 = vst.msk [vmem:[#allocation3 + $0x30] sm:$0xff] %vm588_vm2, %v1251_v41 }
 0x836   : > { %1257 = vst.msk [vmem:[#allocation3 + $0x38] sm:$0xff] %vm588_vm2, %v1252_v42 }
 0x837 PF: > { %p1554_p7 = scmp.ne.s32.totalorder %s1714_s22, 3 }
 0x839   : > { %1261 = sbr.rel (%p1554_p7) target bundleno = 2262 (0x8d6), region = 76 }
 0x83e   : > { %v1262_v43 = vld [vmem:[#allocation4] sm:$0xff]  ;;  %v1264_v46 = vld [vmem:[#allocation4 + $0x10] sm:$0xff]  ;;  %v1263_v49 = vld [vmem:[#allocation4 + $0x8] sm:$0xff] }
 0x83f   : > { %v1267_v44 = vld [vmem:[#allocation3 + $0x20] sm:$0xff]  ;;  %v1269_v48 = vld [vmem:[#allocation3 + $0x30] sm:$0xff]  ;;  %v1268_v50 = vld [vmem:[#allocation3 + $0x28] sm:$0xff] }
 0x840   : > { %v1271_v47 = vsub.f32 %v1262_v43, %v1267_v44  ;;  %v1273_v51 = vsub.f32 %v1264_v46, %v1269_v48  ;;  %v1265_v52 = vld [vmem:[#allocation4 + $0x18] sm:$0xff]  ;;  %v1272_v55 = vsub.f32 %v1263_v49, %v1268_v50 }
 0x841   : > { %v1270_v53 = vld [vmem:[#allocation3 + $0x38] sm:$0xff] }
 0x842   : > { %v1275_v54 = vmul.f32 %v1271_v47, %v1271_v47  ;;  %v1277_v56 = vmul.f32 %v1273_v51, %v1273_v51  ;;  %v1274_v57 = vsub.f32 %v1265_v52, %v1270_v53  ;;  %v1276_v7 = vmul.f32 %v1272_v55, %v1272_v55 }
 0x844   : > { %v1279_v58 = vsel %vm588_vm2, %v1275_v54, 0.0  ;;  %v1285_v59 = vsel %vm588_vm2, %v1277_v56, 0.0  ;;  %v1278_v60 = vmul.f32 %v1274_v57, %v1274_v57  ;;  %v1282_v61 = vsel %vm588_vm2, %v1276_v7, 0.0 }
 0x845   : > { %1280 = vadd.xlane.f32.xlu0 %v1279_v58  ;;  %1286 = vadd.xlane.f32.xlu1 %v1285_v59 }
 0x846   : > { %v1288_v62 = vsel %vm588_vm2, %v1278_v60, 0.0 }
 0x84d   : > { %1283 = vadd.xlane.f32.xlu0 %v1282_v61  ;;  %1289 = vadd.xlane.f32.xlu1 %v1288_v62 }
 0x8b8   : > { %v1281_v63 = vpop.xlane.xlu0 %1280  ;;  %v1287_v8 = vpop.xlane.xlu1 %1286 }
 0x8c0   : > { %v1284_v0 = vpop.xlane.xlu0 %1283  ;;  %v1290_v10 = vpop.xlane.xlu1 %1289 }
 0x8c1   : > { %v1291_v1 = vadd.f32 %v1284_v0, %v1281_v63 }
 0x8c3   : > { %v1292_v2 = vadd.f32 %v1291_v1, %v1287_v8 }
 0x8c5   : > { %v1293_v11 = vadd.f32 %v1292_v2, %v1290_v10 }
 0x8c7   : > { %v1294_v3 = vrot.slane %v1293_v11, 4 }
 0x8c9   : > { %v1295_v4 = vadd.f32 %v1294_v3, %v1293_v11 }
 0x8cb   : > { %v1296_v5 = vrot.slane %v1295_v4, 2 }
 0x8cd   : > { %v1297_v6 = vadd.f32 %v1296_v5, %v1295_v4 }
 0x8cf   : > { %v1298_v9 = vrot.slane %v1297_v6, 1 }
 0x8d1   : > { %v1299_v12 = vadd.f32 %v1298_v9, %v1297_v6 }
 0x8d3   : > { %v1300_v45 = vmul.f32 0.0009765625, %v1299_v12 }
 0x8d5   : > { %1301 = vst.msk [vmem:[%s1950_s12 + $0x2] sm:$0x1] %vm1070_vm3, %v1300_v45 }
 0x8d6 PF: > { %p1572_p8 = scmp.eq.s32.totalorder %s1714_s22, 4  ;;  %s1640_s24 = smov [#allocation4]  }
 0x8d7   : > { %s1316_s17 = sshll.u32 %s1640_s24, 4  ;;  %s1960_s21 = sld [smem:[#allocation10_spill]]  ;;  %s1317_s17 = int_to_ptr.vmem [resolvable:$true] %s1316_s17 }
 0x8d8   : > { %s1641_s30 = smov 128   ;;  %s1642_s20 = smov 8  }
 0x8dd   : > { %s1318_s26 = sshll.u32 %s1960_s21, 4  ;;  %s1319_s26 = int_to_ptr.hbm [resolvable:$true] %s1318_s26 }
 0x8de   : > { %1569 = dma.vmem_to_hbm [thread:$0]  (%p1572_p8), %s1317_s17, 512, %s1319_s26, [#allocation5], %s1641_s30, %s1641_s30, %s1642_s20  }
 0x8df   : > { %1631 = dma.done.wait (%p1572_p8), [#allocation5], 512  }
 0x8e0   : > { %1633 = vsyncadd (%p1572_p8), [#allocation5], 4294966784 }
 0x8e1 PF: > { %s1961_s1 = sld [smem:[#allocation7_spill]] }
 0x8e7   : > { %s24_s21 = sadd.s32 1, %s1961_s1  }
 0x8e8   : > { %p21_p9 = scmp.ge.s32.totalorder %s24_s21, 7  }
 0x8ea   :  { %23 = sbr.rel (!%p21_p9) target bundleno = 5 (0x5), region = 158 }
 0x8ef   :  { %1362 = vsyncpa [#allocation5], 1 }
 0x8f0   :  { %1364 = vsyncpa [#allocation5 + $0x1], 1 }

</bundles_post_ra>
